<compile_context>
chip_gen: v6e
topology: v6e:2x2x1
jax: 0.10.0
libtpu: 0.0.40
codegen_flags: <defaults>
</compile_context>

<pallas_src>
import functools

import jax
import jax.numpy as jnp
from jax.experimental import pallas as pl
from jax.experimental.pallas import tpu as pltpu


# ----------------------------------------------------------------------------------
# Capability probes (module scope, outside of any jit trace).
# ----------------------------------------------------------------------------------
def _probe_buffered1():
    """True iff BlockSpec(..., pipeline_mode=pl.Buffered(1)) compiles & runs here."""
    try:
        def _k(a_ref, o_ref):
            o_ref[...] = a_ref[...] + 1.0

        fn = pl.pallas_call(
            _k,
            out_shape=jax.ShapeDtypeStruct((8, 128), jnp.float32),
            grid=(2,),
            in_specs=[pl.BlockSpec((8, 128), lambda i: (0, 0),
                                   pipeline_mode=pl.Buffered(1))],
            out_specs=pl.BlockSpec((8, 128), lambda i: (0, 0)),
        )
        jax.block_until_ready(fn(jnp.zeros((8, 128), jnp.float32)))
        return True
    except Exception:
        return False


def _derive_vmem_limit():
    """Generation-aware VMEM budget: ~85% of physical, >=8 MiB headroom for Mosaic scratch."""
    try:
        cap = int(pltpu.get_tpu_info().vmem_capacity_bytes)
        return int(min(cap * 0.85, cap - 8 * 1024 * 1024))
    except Exception:
        return 48 * 1024 * 1024   # conservative fallback that fits every generation


_BUFFERED1_OK = _probe_buffered1()
_VMEM_LIMIT = _derive_vmem_limit()


def _pick_tile(n, candidates, quantum):
    """Largest candidate that divides n and is a multiple of `quantum`, else n (full)."""
    for c in candidates:
        if c <= n and n % c == 0 and c % quantum == 0:
            return c
    return n


def _inv_spec(shape):
    """Spec for a grid-invariant input (constant index_map): single-buffer if supported."""
    idx = (lambda i, j, _r=len(shape): (0,) * _r)
    if _BUFFERED1_OK:
        return pl.BlockSpec(shape, idx, pipeline_mode=pl.Buffered(1))
    return pl.BlockSpec(shape, idx)


# ----------------------------------------------------------------------------------
# Kernel A: RMSNorm + fused QKV projection + RoPE + position-wise attention.
# Grid = (B, S//TS).  Output layout (B*H, S, DH) == torch transpose(1,2) folded in.
# ----------------------------------------------------------------------------------
def _attn_kernel(x_ref, w_in_ref, w_qkv_ref, b_qkv_ref, cs_ref, sel_ref, exp_ref,
                 out_ref, *, H, HKV, DH, eps, compute_dtype):
    f32 = jnp.float32
    DH2 = DH // 2
    D = H * DH
    KVD = HKV * DH

    x = x_ref[...]                                               # (TS, D) f32
    var = jnp.mean(x * x, axis=-1, keepdims=True)
    xn = (x * jax.lax.rsqrt(var + eps)) * w_in_ref[...]
    xn_c = xn.astype(compute_dtype)

    # One fused QKV matmul (f32 accumulation), then lane-slice.
    qkv = jnp.dot(xn_c, w_qkv_ref[...], preferred_element_type=f32) + b_qkv_ref[...]
    q = qkv[:, :D]                                               # evens|odds per head
    k = qkv[:, D:D + KVD]                                        # evens|odds per group
    v = qkv[:, D + KVD:]                                         # natural layout

    # Full-width RoPE from the packed [cos | sin] table.
    cs = cs_ref[...]                                             # (TS, DH)
    cos = cs[:, :DH2]
    sin = cs[:, DH2:]
    cq = jnp.tile(cos, (1, H))
    sq = jnp.tile(sin, (1, H))
    ck = jnp.tile(cos, (1, HKV))
    sk = jnp.tile(sin, (1, HKV))

    HQ = H * DH2
    HK = HKV * DH2
    qe, qo = q[:, :HQ], q[:, HQ:]
    ke, ko = k[:, :HK], k[:, HK:]
    qe_r = qe * cq - qo * sq
    qo_r = qo * cq + qe * sq
    ke_r = ke * ck - ko * sk
    ko_r = ko * ck + ke * sk

    sel = sel_ref[...]                                           # (H*DH2, H)  compute_dtype
    expand = exp_ref[...]                                        # (H, D)      f32
    scale = 1.0 / (DH ** 0.5)

    # Scores: one MXU selector-matmul per kv head (reduction on the MXU, not the XLU);
    # operands cast to compute_dtype (selector is exact 0/1).
    scores = []
    for g in range(HKV):
        ket = jnp.tile(ke_r[:, g * DH2:(g + 1) * DH2], (1, H))   # (TS, H*DH2)
        kot = jnp.tile(ko_r[:, g * DH2:(g + 1) * DH2], (1, H))
        prod = (qe_r * ket + qo_r * kot).astype(compute_dtype)
        scores.append(jnp.dot(prod, sel, preferred_element_type=f32) * scale)   # (TS, H)

    # Softmax over the HKV kv heads (VPU/EUP only).
    m = scores[0]
    for g in range(1, HKV):
        m = jnp.maximum(m, scores[g])
    ps = [jnp.exp(s - m) for s in scores]
    den = ps[0]
    for g in range(1, HKV):
        den = den + ps[g]
    inv = pl.reciprocal(den, approx=True)                        # EUP

    # Output: broadcast probabilities across each head's dims via an MXU matmul.
    # TODO(synk): the expand matmul is tiny (K=H) and is kept in f32; it can also be cast
    #             to compute_dtype at a small additional quantization cost.
    out = None
    for g in range(HKV):
        p_exp = jnp.dot(ps[g] * inv, expand, preferred_element_type=f32)   # (TS, D)
        vt = jnp.tile(v[:, g * DH:(g + 1) * DH], (1, H))                   # (TS, D)
        contrib = p_exp * vt
        out = contrib if out is None else out + contrib

    # Write in (head, seq, head_dim) layout -> torch's transpose(1,2).reshape is free.
    for h in range(H):
        out_ref[h, :, :] = out[:, h * DH:(h + 1) * DH].astype(out_ref.dtype)


# ----------------------------------------------------------------------------------
# Kernel B: o_proj + residual + post-attention RMSNorm + fused SwiGLU MLP + residual.
# Grid = (R//TM, I//TI); the I axis is an "arbitrary" reduction axis accumulated into
# the resident output block (init at j == 0, then +=).
# ----------------------------------------------------------------------------------
def _mlp_kernel(attn_ref, x_ref, wo_ref, bo_ref, w_post_ref,
                wgu_ref, bgu_ref, wd_ref, bd_ref,
                out_ref, hn_scratch, *, TI, eps, compute_dtype):
    f32 = jnp.float32
    j = pl.program_id(1)

    @pl.when(j == 0)
    def _():
        o = jnp.dot(attn_ref[...], wo_ref[...], preferred_element_type=f32) + bo_ref[...]
        h1 = x_ref[...] + o                                      # residual 1
        var = jnp.mean(h1 * h1, axis=-1, keepdims=True)
        hn = (h1 * jax.lax.rsqrt(var + eps)) * w_post_ref[...]
        hn_scratch[...] = hn.astype(compute_dtype)
        out_ref[...] = h1 + bd_ref[...]                          # residual 2 + down bias (once)

    hn = hn_scratch[...]
    gu = jnp.dot(hn, wgu_ref[...], preferred_element_type=f32) + bgu_ref[...]   # (TM, 2*TI)
    g = gu[:, :TI]
    u = gu[:, TI:]
    act = g * jax.nn.sigmoid(g)                                  # SiLU, f32
    out_ref[...] += jnp.dot((act * u).astype(compute_dtype), wd_ref[...],
                            preferred_element_type=f32)


# ----------------------------------------------------------------------------------
# Host-side helpers / wrapper
# ----------------------------------------------------------------------------------
def _split_evens_odds_perm(num_heads, head_dim):
    dh2 = head_dim // 2
    evens = [h * head_dim + 2 * j for h in range(num_heads) for j in range(dh2)]
    odds = [h * head_dim + 2 * j + 1 for h in range(num_heads) for j in range(dh2)]
    return jnp.asarray(evens + odds, dtype=jnp.int32)


def transformer_block_pallas(x, params, *, num_heads, num_kv_heads, eps,
                             theta=10000.0, compute_dtype=jnp.bfloat16,
                             seq_tile=None, row_tile=None, inter_tile=512):
    B, S, D = x.shape
    H, HKV = num_heads, num_kv_heads
    DH = D // H
    DH2 = DH // 2
    KVD = HKV * DH
    I = params["w_gate"].shape[0]
    R = B * S
    f32 = jnp.float32
    cdt = compute_dtype

    vmem_limit = _VMEM_LIMIT
    if row_tile is None:                       # bigger MLP row tile on 128-MiB parts
        row_tile = 512 if vmem_limit >= 80 * 1024 * 1024 else 256
    if seq_tile is None:
        seq_tile = 256

    TS = _pick_tile(S, (seq_tile, 512, 256, 128, 64, 32, 16, 8), 8)
    TM = _pick_tile(R, (row_tile, 512, 256, 128, 64, 32, 16, 8), 8)
    TI = _pick_tile(I, (inter_tile, 512, 256, 128), 128)
    NS = S // TS
    NR = R // TM
    NI = I // TI

    # RoPE table packed [cos | sin] per sequence position (one lane-dense input).
    freqs = jnp.exp(jnp.arange(0, DH, 2, dtype=f32) * -(jnp.log(jnp.float32(theta)) / DH))
    pos = jnp.arange(S, dtype=f32)[:, None]
    sinusoid = pos * freqs[None, :]
    cos_sin = jnp.concatenate([jnp.cos(sinusoid), jnp.sin(sinusoid)], axis=1)   # (S, DH)

    # Fused QKV weight; q/k output columns permuted to [all even dims | all odd dims].
    perm_q = _split_evens_odds_perm(H, DH)
    perm_k = _split_evens_odds_perm(HKV, DH)
    w_qkv = jnp.concatenate([params["w_q"].T[:, perm_q],
                             params["w_k"].T[:, perm_k],
                             params["w_v"].T], axis=1).astype(cdt)              # (D, D+2*KVD)
    b_qkv = jnp.concatenate([params["b_q"][perm_q],
                             params["b_k"][perm_k],
                             params["b_v"]])[None, :].astype(f32)

    # Block-diagonal selectors: MXU score reduction + probability broadcast.
    sel = (jnp.arange(H * DH2)[:, None] // DH2 == jnp.arange(H)[None, :]).astype(cdt)
    expand = (jnp.arange(H)[:, None] == jnp.arange(D)[None, :] // DH).astype(f32)

    x_rows = x.reshape(R, D)

    # ------------------------------ Kernel A ------------------------------
    attn_bhsd = pl.pallas_call(
        functools.partial(_attn_kernel, H=H, HKV=HKV, DH=DH, eps=eps, compute_dtype=cdt),
        out_shape=jax.ShapeDtypeStruct((B * H, S, DH), cdt),
        grid=(B, NS),
        in_specs=[
            pl.BlockSpec((TS, D), lambda b, s, _ns=NS: (b * _ns + s, 0)),   # x rows
            _inv_spec((1, D)),                                              # input_norm weight
            _inv_spec((D, D + 2 * KVD)),                                    # fused qkv weight
            _inv_spec((1, D + 2 * KVD)),                                    # fused qkv bias
            pl.BlockSpec((TS, DH), lambda b, s: (s, 0)),                    # packed cos|sin
            _inv_spec((H * DH2, H)),                                        # score selector
            _inv_spec((H, D)),                                              # prob expander
        ],
        out_specs=pl.BlockSpec((H, TS, DH), lambda b, s: (b, s, 0)),
        compiler_params=pltpu.CompilerParams(
            dimension_semantics=("parallel", "parallel"),
            vmem_limit_bytes=vmem_limit),
    )(x_rows, params["w_input_norm"][None, :].astype(f32), w_qkv, b_qkv,
      cos_sin, sel, expand)

    # (B*H, S, DH) flattened row-major == torch's attn.transpose(1,2).reshape(B, S, D).
    attn_scr = attn_bhsd.reshape(R, D)

    # ------------------------------ Kernel B ------------------------------
    # gate/up packed per I-tile: columns of tile j are [gate_tile_j | up_tile_j].
    wg = params["w_gate"].T.reshape(D, NI, TI)
    wu = params["w_up"].T.reshape(D, NI, TI)
    w_gu = jnp.concatenate([wg, wu], axis=2).reshape(D, 2 * I).astype(cdt)
    b_gu = jnp.concatenate([params["b_gate"].reshape(NI, TI),
                            params["b_up"].reshape(NI, TI)],
                           axis=1).reshape(1, 2 * I).astype(f32)

    rows_b = lambda width: pl.BlockSpec((TM, width), lambda i, j: (i, 0))

    out_rows = pl.pallas_call(
        functools.partial(_mlp_kernel, TI=TI, eps=eps, compute_dtype=cdt),
        out_shape=jax.ShapeDtypeStruct((R, D), f32),
        grid=(NR, NI),
        in_specs=[
            rows_b(D),                                          # attention rows (scrambled, cdt)
            rows_b(D),                                          # residual x rows
            _inv_spec((D, D)),                                  # o_proj weight
            _inv_spec((1, D)),                                  # o_proj bias
            _inv_spec((1, D)),                                  # post_attention_norm weight
            pl.BlockSpec((D, 2 * TI), lambda i, j: (0, j)),     # fused gate|up weight tile
            pl.BlockSpec((1, 2 * TI), lambda i, j: (0, j)),     # fused gate|up bias tile
            pl.BlockSpec((TI, D), lambda i, j: (j, 0)),         # down_proj weight tile (K tile)
            _inv_spec((1, D)),                                  # down bias
        ],
        out_specs=rows_b(D),
        scratch_shapes=[pltpu.VMEM((TM, D), cdt)],              # post-norm activations
        compiler_params=pltpu.CompilerParams(
            dimension_semantics=("parallel", "arbitrary"),
            vmem_limit_bytes=vmem_limit),
    )(attn_scr, x_rows,
      params["w_o"].T.astype(cdt), params["b_o"][None, :].astype(f32),
      params["w_post_norm"][None, :].astype(f32),
      w_gu, b_gu,
      params["w_down"].T.astype(cdt), params["b_down"][None, :].astype(f32))

    return out_rows.reshape(B, S, D)


# ----------------------------------------------------------------------------------
# Pure-JAX reference mirroring the PyTorch forward exactly.  `compute_dtype` casts the
# matmul inputs at the same points as the kernel (f32 accumulation) so the comparison
# isolates kernel-structure errors from the intended bf16 quantization.
# ----------------------------------------------------------------------------------
def _ref_forward(x, params, *, num_heads, num_kv_heads, eps, theta=10000.0,
                 compute_dtype=jnp.float32):
    f32 = jnp.float32
    B, S, D = x.shape
    H, HKV = num_heads, num_kv_heads
    DH = D // H
    cdt = compute_dtype

    def mm(a, w, b):
        return jnp.dot(a.astype(cdt), w.T.astype(cdt), preferred_element_type=f32) + b

    def rmsnorm(t, w):
        var = jnp.mean(t * t, axis=-1, keepdims=True)
        return w * (t * jax.lax.rsqrt(var + eps))

    def rope(t):
        _, S_, _, dh = t.shape
        pos = jnp.arange(S_, dtype=f32)[:, None]
        freqs = jnp.exp(jnp.arange(0, dh, 2, dtype=f32) * -(jnp.log(jnp.float32(theta)) / dh))
        sinusoid = pos * freqs[None, :]
        sin = jnp.sin(sinusoid)[None, :, None, :]
        cos = jnp.cos(sinusoid)[None, :, None, :]
        e = t[..., 0::2]
        o = t[..., 1::2]
        ne = e * cos - o * sin
        no = o * cos + e * sin
        return jnp.stack([ne, no], axis=-1).reshape(t.shape)

    residual = x
    xn = rmsnorm(x, params["w_input_norm"])
    q = mm(xn, params["w_q"], params["b_q"]).reshape(B, S, H, DH)
    k = mm(xn, params["w_k"], params["b_k"]).reshape(B, S, HKV, DH)
    v = mm(xn, params["w_v"], params["b_v"]).reshape(B, S, HKV, DH)
    q = rope(q)
    k = rope(k)
    # F.scaled_dot_product_attention on (B, S, H, Dh) WITHOUT transpose: the softmax
    # axis is the (kv-)head axis at each position.
    scores = jnp.einsum("bshd,bsgd->bshg", q, k) / jnp.sqrt(jnp.float32(DH))
    w = jax.nn.softmax(scores, axis=-1)
    attn = jnp.einsum("bshg,bsgd->bshd", w, v)
    attn = jnp.transpose(attn, (0, 2, 1, 3)).reshape(B, S, D)
    attn = mm(attn, params["w_o"], params["b_o"])
    x1 = residual + attn
    hn = rmsnorm(x1, params["w_post_norm"])
    g = mm(hn, params["w_gate"], params["b_gate"])
    u = mm(hn, params["w_up"], params["b_up"])
    act = g * jax.nn.sigmoid(g)
    ff = mm(act * u, params["w_down"], params["b_down"])
    return x1 + ff


# ----------------------------------------------------------------------------------
if __name__ == "__main__":
    B, S = 2, 8
    hidden = 32
    num_heads = 4
    num_kv_heads = 2
    head_dim = hidden // num_heads
    intermediate = 64
    eps = 1e-5
    f32 = jnp.float32

    key = jax.random.PRNGKey(0)
    ks = jax.random.split(key, 16)

    def linear(k, out_f, in_f):
        kw, kb = jax.random.split(k)
        w = jax.random.normal(kw, (out_f, in_f), f32) * (1.0 / jnp.sqrt(jnp.float32(in_f)))
        b = jax.random.normal(kb, (out_f,), f32) * 0.02
        return w, b

    params = {}
    params["w_q"], params["b_q"] = linear(ks[0], hidden, hidden)
    params["w_k"], params["b_k"] = linear(ks[1], num_kv_heads * head_dim, hidden)
    params["w_v"], params["b_v"] = linear(ks[2], num_kv_heads * head_dim, hidden)
    params["w_o"], params["b_o"] = linear(ks[3], hidden, hidden)
    params["w_gate"], params["b_gate"] = linear(ks[4], intermediate, hidden)
    params["w_up"], params["b_up"] = linear(ks[5], intermediate, hidden)
    params["w_down"], params["b_down"] = linear(ks[6], hidden, intermediate)
    params["w_input_norm"] = 1.0 + 0.1 * jax.random.normal(ks[7], (hidden,), f32)
    params["w_post_norm"] = 1.0 + 0.1 * jax.random.normal(ks[8], (hidden,), f32)

    x = jax.random.normal(ks[9], (B, S, hidden), f32)

    # 1) f32 compute path vs. the pure-f32 reference (validates module semantics).
    run_f32 = jax.jit(functools.partial(
        transformer_block_pallas, num_heads=num_heads, num_kv_heads=num_kv_heads,
        eps=eps, compute_dtype=jnp.float32))
    out_f32 = jax.block_until_ready(run_f32(x, params))
    ref_f32 = jax.block_until_ready(_ref_forward(
        x, params, num_heads=num_heads, num_kv_heads=num_kv_heads, eps=eps,
        compute_dtype=jnp.float32))
    err_f32 = float(jnp.max(jnp.abs(out_f32 - ref_f32)))
    if not bool(jnp.allclose(out_f32, ref_f32, atol=2e-2, rtol=2e-2)):
        raise AssertionError(f"f32 Pallas output mismatch vs reference, max abs err = {err_f32}")

    # 2) bf16 matmul path (production config) vs. a reference that quantizes the matmul
    #    inputs at the same points.
    run_bf16 = jax.jit(functools.partial(
        transformer_block_pallas, num_heads=num_heads, num_kv_heads=num_kv_heads,
        eps=eps, compute_dtype=jnp.bfloat16))
    out_bf16 = jax.block_until_ready(run_bf16(x, params))
    ref_bf16 = jax.block_until_ready(_ref_forward(
        x, params, num_heads=num_heads, num_kv_heads=num_kv_heads, eps=eps,
        compute_dtype=jnp.bfloat16))
    err_bf16 = float(jnp.max(jnp.abs(out_bf16 - ref_bf16)))
    if not bool(jnp.allclose(out_bf16, ref_bf16, atol=2e-2, rtol=2e-2)):
        raise AssertionError(f"bf16 Pallas output mismatch vs reference, max abs err = {err_bf16}")

    print("KERNEL_OK")
</pallas_src>

<mosaic_0001>
module attributes {stable_mosaic.version = 11 : i64} {
  func.func @_k(%arg0: i32, %arg1: memref<8x128xf32, #tpu.memory_space<vmem>>, %arg2: memref<8x128xf32, #tpu.memory_space<vmem>>) attributes {dimension_semantics = [#tpu.dimension_semantics<arbitrary>], iteration_bounds = array<i64: 2>, scalar_prefetch = 0 : i64, scratch_operands = 0 : i64, tpu.core_type = #tpu.core_type<tc>, window_params = [{pipeline_mode = #tpu.pipeline_mode<synchronous>, transform_indices = @transform_0, window_bounds = array<i64: 8, 128>}, {pipeline_mode = #tpu.pipeline_mode<synchronous>, transform_indices = @transform_1, window_bounds = array<i64: 8, 128>}]} {
    %c0 = arith.constant 0 : index
    %c0_0 = arith.constant 0 : index
    %0 = vector.load %arg1[%c0, %c0_0] : memref<8x128xf32, #tpu.memory_space<vmem>>, vector<8x128xf32>
    %cst = arith.constant 1.000000e+00 : f32
    %1 = vector.broadcast %cst : f32 to vector<8x128xf32>
    %2 = arith.addf %0, %1 : vector<8x128xf32>
    %c0_1 = arith.constant 0 : index
    %c0_2 = arith.constant 0 : index
    %3 = vector.load %arg2[%c0_1, %c0_2] : memref<8x128xf32, #tpu.memory_space<vmem>>, vector<8x128xf32>
    tpu.vector_store %arg2[%c0_1, %c0_2], %2 {strides = array<i32>} : memref<8x128xf32, #tpu.memory_space<vmem>>, vector<8x128xf32>,
    return
  }
  func.func @transform_0(%arg0: i32) -> (i32, i32) {
    %c0_i32 = arith.constant 0 : i32
    %c0_i32_0 = arith.constant 0 : i32
    %c0_i32_1 = arith.constant 0 : i32
    return %c0_i32, %c0_i32_0 : i32, i32
  }
  func.func @transform_1(%arg0: i32) -> (i32, i32) {
    %c0_i32 = arith.constant 0 : i32
    %c0_i32_0 = arith.constant 0 : i32
    %c0_i32_1 = arith.constant 0 : i32
    return %c0_i32, %c0_i32_0 : i32, i32
  }
}

module attributes {stable_mosaic.version = 11 : i64} {
  func.func @_mlp_kernel(%arg0: i32, %arg1: i32, %arg2: memref<16x32xf32, #tpu.memory_space<vmem>>, %arg3: memref<16x32xf32, #tpu.memory_space<vmem>>, %arg4: memref<32x32xf32, #tpu.memory_space<vmem>>, %arg5: memref<1x32xf32, #tpu.memory_space<vmem>>, %arg6: memref<1x32xf32, #tpu.memory_space<vmem>>, %arg7: memref<32x128xf32, #tpu.memory_space<vmem>>, %arg8: memref<1x128xf32, #tpu.memory_space<vmem>>, %arg9: memref<64x32xf32, #tpu.memory_space<vmem>>, %arg10: memref<1x32xf32, #tpu.memory_space<vmem>>, %arg11: memref<16x32xf32, #tpu.memory_space<vmem>>, %arg12: memref<16x32xf32, #tpu.memory_space<vmem>>) attributes {dimension_semantics = [#tpu.dimension_semantics<parallel>, #tpu.dimension_semantics<arbitrary>], iteration_bounds = array<i64: 1, 1>, scalar_prefetch = 0 : i64, scratch_operands = 1 : i64, tpu.core_type = #tpu.core_type<tc>, window_params = [{transform_indices = @transform_0, window_bounds = array<i64: 16, 32>}, {transform_indices = @transform_1, window_bounds = array<i64: 16, 32>}, {pipeline_mode = #tpu.pipeline_mode<synchronous>, transform_indices = @transform_2, window_bounds = array<i64: 32, 32>}, {pipeline_mode = #tpu.pipeline_mode<synchronous>, transform_indices = @transform_3, window_bounds = array<i64: 1, 32>}, {pipeline_mode = #tpu.pipeline_mode<synchronous>, transform_indices = @transform_4, window_bounds = array<i64: 1, 32>}, {transform_indices = @transform_5, window_bounds = array<i64: 32, 128>}, {transform_indices = @transform_6, window_bounds = array<i64: 1, 128>}, {transform_indices = @transform_7, window_bounds = array<i64: 64, 32>}, {pipeline_mode = #tpu.pipeline_mode<synchronous>, transform_indices = @transform_8, window_bounds = array<i64: 1, 32>}, {transform_indices = @transform_9, window_bounds = array<i64: 16, 32>}]} {
    %c0_i32 = arith.constant 0 : i32
    %0 = arith.cmpi eq, %arg1, %c0_i32 : i32
    %1 = arith.extui %0 : i1 to i32
    %c0_i32_0 = arith.constant 0 : i32
    %2 = arith.cmpi ne, %1, %c0_i32_0 : i32
    scf.if %2 {
      %c0_14 = arith.constant 0 : index
      %c0_15 = arith.constant 0 : index
      %23 = vector.load %arg2[%c0_14, %c0_15] : memref<16x32xf32, #tpu.memory_space<vmem>>, vector<16x32xf32>
      %c0_16 = arith.constant 0 : index
      %c0_17 = arith.constant 0 : index
      %24 = vector.load %arg4[%c0_16, %c0_17] : memref<32x32xf32, #tpu.memory_space<vmem>>, vector<32x32xf32>
      %cst_18 = arith.constant dense<0.000000e+00> : vector<16x32xf32>
      %25 = tpu.matmul %23, %24, %cst_18 {dimension_numbers = #tpu.dot_dimension_numbers<[1], [0], [0], [1], [0, 0, 1, 1], [], []>} : vector<16x32xf32>, vector<32x32xf32>, vector<16x32xf32> -> vector<16x32xf32>
      %c0_19 = arith.constant 0 : index
      %c0_20 = arith.constant 0 : index
      %26 = vector.load %arg5[%c0_19, %c0_20] : memref<1x32xf32, #tpu.memory_space<vmem>>, vector<1x32xf32>
      %27 = vector.broadcast %26 : vector<1x32xf32> to vector<16x32xf32>
      %28 = arith.addf %25, %27 : vector<16x32xf32>
      %c0_21 = arith.constant 0 : index
      %c0_22 = arith.constant 0 : index
      %29 = vector.load %arg3[%c0_21, %c0_22] : memref<16x32xf32, #tpu.memory_space<vmem>>, vector<16x32xf32>
      %30 = arith.addf %29, %28 : vector<16x32xf32>
      %31 = arith.mulf %30, %30 : vector<16x32xf32>
      %cst_23 = arith.constant dense<0.000000e+00> : vector<16xf32>
      %32 = vector.multi_reduction <add>, %31, %cst_23 [1] : vector<16x32xf32> to vector<16xf32>
      %33 = vector.shape_cast %32 : vector<16xf32> to vector<16x1xf32>
      %cst_24 = arith.constant 3.200000e+01 : f32
      %34 = vector.broadcast %cst_24 : f32 to vector<16x1xf32>
      %35 = arith.divf %33, %34 : vector<16x1xf32>
      %cst_25 = arith.constant 9.99999974E-6 : f32
      %36 = vector.broadcast %cst_25 : f32 to vector<16x1xf32>
      %37 = arith.addf %35, %36 : vector<16x1xf32>
      %38 = math.rsqrt %37 : vector<16x1xf32>
      %39 = vector.broadcast %38 : vector<16x1xf32> to vector<16x32xf32>
      %40 = arith.mulf %30, %39 : vector<16x32xf32>
      %c0_26 = arith.constant 0 : index
      %c0_27 = arith.constant 0 : index
      %41 = vector.load %arg6[%c0_26, %c0_27] : memref<1x32xf32, #tpu.memory_space<vmem>>, vector<1x32xf32>
      %42 = vector.broadcast %41 : vector<1x32xf32> to vector<16x32xf32>
      %43 = arith.mulf %40, %42 : vector<16x32xf32>
      %c0_28 = arith.constant 0 : index
      %c0_29 = arith.constant 0 : index
      %44 = vector.load %arg12[%c0_28, %c0_29] : memref<16x32xf32, #tpu.memory_space<vmem>>, vector<16x32xf32>
      tpu.vector_store %arg12[%c0_28, %c0_29], %43 {strides = array<i32>} : memref<16x32xf32, #tpu.memory_space<vmem>>, vector<16x32xf32>,
      %c0_30 = arith.constant 0 : index
      %c0_31 = arith.constant 0 : index
      %45 = vector.load %arg10[%c0_30, %c0_31] : memref<1x32xf32, #tpu.memory_space<vmem>>, vector<1x32xf32>
      %46 = vector.broadcast %45 : vector<1x32xf32> to vector<16x32xf32>
      %47 = arith.addf %30, %46 : vector<16x32xf32>
      %c0_32 = arith.constant 0 : index
      %c0_33 = arith.constant 0 : index
      %48 = vector.load %arg11[%c0_32, %c0_33] : memref<16x32xf32, #tpu.memory_space<vmem>>, vector<16x32xf32>
      tpu.vector_store %arg11[%c0_32, %c0_33], %47 {strides = array<i32>} : memref<16x32xf32, #tpu.memory_space<vmem>>, vector<16x32xf32>,
    } else {
    }
    %c0 = arith.constant 0 : index
    %c0_1 = arith.constant 0 : index
    %3 = vector.load %arg12[%c0, %c0_1] : memref<16x32xf32, #tpu.memory_space<vmem>>, vector<16x32xf32>
    %c0_2 = arith.constant 0 : index
    %c0_3 = arith.constant 0 : index
    %4 = vector.load %arg7[%c0_2, %c0_3] : memref<32x128xf32, #tpu.memory_space<vmem>>, vector<32x128xf32>
    %cst = arith.constant dense<0.000000e+00> : vector<16x128xf32>
    %5 = tpu.matmul %3, %4, %cst {dimension_numbers = #tpu.dot_dimension_numbers<[1], [0], [0], [1], [0, 0, 1, 1], [], []>} : vector<16x32xf32>, vector<32x128xf32>, vector<16x128xf32> -> vector<16x128xf32>
    %c0_4 = arith.constant 0 : index
    %c0_5 = arith.constant 0 : index
    %6 = vector.load %arg8[%c0_4, %c0_5] : memref<1x128xf32, #tpu.memory_space<vmem>>, vector<1x128xf32>
    %7 = vector.broadcast %6 : vector<1x128xf32> to vector<16x128xf32>
    %8 = arith.addf %5, %7 : vector<16x128xf32>
    %9 = vector.extract_strided_slice %8 {offsets = [0, 0], sizes = [16, 64], strides = [1, 1]} : vector<16x128xf32> to vector<16x64xf32>
    %10 = vector.extract_strided_slice %8 {offsets = [0, 64], sizes = [16, 64], strides = [1, 1]} : vector<16x128xf32> to vector<16x64xf32>
    %11 = arith.negf %9 : vector<16x64xf32>
    %12 = math.exp %11 : vector<16x64xf32>
    %cst_6 = arith.constant 1.000000e+00 : f32
    %13 = vector.broadcast %cst_6 : f32 to vector<16x64xf32>
    %14 = arith.addf %13, %12 : vector<16x64xf32>
    %15 = arith.divf %13, %14 : vector<16x64xf32>
    %16 = arith.mulf %9, %15 : vector<16x64xf32>
    %c0_7 = arith.constant 0 : index
    %c0_8 = arith.constant 0 : index
    %17 = vector.load %arg11[%c0_7, %c0_8] : memref<16x32xf32, #tpu.memory_space<vmem>>, vector<16x32xf32>
    %18 = arith.mulf %16, %10 : vector<16x64xf32>
    %c0_9 = arith.constant 0 : index
    %c0_10 = arith.constant 0 : index
    %19 = vector.load %arg9[%c0_9, %c0_10] : memref<64x32xf32, #tpu.memory_space<vmem>>, vector<64x32xf32>
    %cst_11 = arith.constant dense<0.000000e+00> : vector<16x32xf32>
    %20 = tpu.matmul %18, %19, %cst_11 {dimension_numbers = #tpu.dot_dimension_numbers<[1], [0], [0], [1], [0, 0, 1, 1], [], []>} : vector<16x64xf32>, vector<64x32xf32>, vector<16x32xf32> -> vector<16x32xf32>
    %21 = arith.addf %17, %20 : vector<16x32xf32>
    %c0_12 = arith.constant 0 : index
    %c0_13 = arith.constant 0 : index
    %22 = vector.load %arg11[%c0_12, %c0_13] : memref<16x32xf32, #tpu.memory_space<vmem>>, vector<16x32xf32>
    tpu.vector_store %arg11[%c0_12, %c0_13], %21 {strides = array<i32>} : memref<16x32xf32, #tpu.memory_space<vmem>>, vector<16x32xf32>,
    return
  }
  func.func @transform_0(%arg0: i32, %arg1: i32) -> (i32, i32) {
    %c0_i32 = arith.constant 0 : i32
    %c0_i32_0 = arith.constant 0 : i32
    return %arg0, %c0_i32 : i32, i32
  }
  func.func @transform_1(%arg0: i32, %arg1: i32) -> (i32, i32) {
    %c0_i32 = arith.constant 0 : i32
    %c0_i32_0 = arith.constant 0 : i32
    return %arg0, %c0_i32 : i32, i32
  }
  func.func @transform_2(%arg0: i32, %arg1: i32) -> (i32, i32) {
    %c0_i32 = arith.constant 0 : i32
    %c0_i32_0 = arith.constant 0 : i32
    %c0_i32_1 = arith.constant 0 : i32
    return %c0_i32, %c0_i32_0 : i32, i32
  }
  func.func @transform_3(%arg0: i32, %arg1: i32) -> (i32, i32) {
    %c0_i32 = arith.constant 0 : i32
    %c0_i32_0 = arith.constant 0 : i32
    %c0_i32_1 = arith.constant 0 : i32
    return %c0_i32, %c0_i32_0 : i32, i32
  }
  func.func @transform_4(%arg0: i32, %arg1: i32) -> (i32, i32) {
    %c0_i32 = arith.constant 0 : i32
    %c0_i32_0 = arith.constant 0 : i32
    %c0_i32_1 = arith.constant 0 : i32
    return %c0_i32, %c0_i32_0 : i32, i32
  }
  func.func @transform_5(%arg0: i32, %arg1: i32) -> (i32, i32) {
    %c0_i32 = arith.constant 0 : i32
    %c0_i32_0 = arith.constant 0 : i32
    return %c0_i32, %arg1 : i32, i32
  }
  func.func @transform_6(%arg0: i32, %arg1: i32) -> (i32, i32) {
    %c0_i32 = arith.constant 0 : i32
    %c0_i32_0 = arith.constant 0 : i32
    return %c0_i32, %arg1 : i32, i32
  }
  func.func @transform_7(%arg0: i32, %arg1: i32) -> (i32, i32) {
    %c0_i32 = arith.constant 0 : i32
    %c0_i32_0 = arith.constant 0 : i32
    return %arg1, %c0_i32 : i32, i32
  }
  func.func @transform_8(%arg0: i32, %arg1: i32) -> (i32, i32) {
    %c0_i32 = arith.constant 0 : i32
    %c0_i32_0 = arith.constant 0 : i32
    %c0_i32_1 = arith.constant 0 : i32
    return %c0_i32, %c0_i32_0 : i32, i32
  }
  func.func @transform_9(%arg0: i32, %arg1: i32) -> (i32, i32) {
    %c0_i32 = arith.constant 0 : i32
    %c0_i32_0 = arith.constant 0 : i32
    return %arg0, %c0_i32 : i32, i32
  }
}

module attributes {stable_mosaic.version = 11 : i64} {
  func.func @_attn_kernel(%arg0: i32, %arg1: i32, %arg2: memref<8x32xf32, #tpu.memory_space<vmem>>, %arg3: memref<1x32xf32, #tpu.memory_space<vmem>>, %arg4: memref<32x64xf32, #tpu.memory_space<vmem>>, %arg5: memref<1x64xf32, #tpu.memory_space<vmem>>, %arg6: memref<8x8xf32, #tpu.memory_space<vmem>>, %arg7: memref<16x4xf32, #tpu.memory_space<vmem>>, %arg8: memref<4x32xf32, #tpu.memory_space<vmem>>, %arg9: memref<4x8x8xf32, #tpu.memory_space<vmem>>) attributes {dimension_semantics = [#tpu.dimension_semantics<parallel>, #tpu.dimension_semantics<parallel>], iteration_bounds = array<i64: 2, 1>, scalar_prefetch = 0 : i64, scratch_operands = 0 : i64, tpu.core_type = #tpu.core_type<tc>, window_params = [{transform_indices = @transform_0, window_bounds = array<i64: 8, 32>}, {pipeline_mode = #tpu.pipeline_mode<synchronous>, transform_indices = @transform_1, window_bounds = array<i64: 1, 32>}, {pipeline_mode = #tpu.pipeline_mode<synchronous>, transform_indices = @transform_2, window_bounds = array<i64: 32, 64>}, {pipeline_mode = #tpu.pipeline_mode<synchronous>, transform_indices = @transform_3, window_bounds = array<i64: 1, 64>}, {transform_indices = @transform_4, window_bounds = array<i64: 8, 8>}, {pipeline_mode = #tpu.pipeline_mode<synchronous>, transform_indices = @transform_5, window_bounds = array<i64: 16, 4>}, {pipeline_mode = #tpu.pipeline_mode<synchronous>, transform_indices = @transform_6, window_bounds = array<i64: 4, 32>}, {transform_indices = @transform_7, window_bounds = array<i64: 4, 8, 8>}]} {
    %c0 = arith.constant 0 : index
    %c0_0 = arith.constant 0 : index
    %0 = vector.load %arg2[%c0, %c0_0] : memref<8x32xf32, #tpu.memory_space<vmem>>, vector<8x32xf32>
    %1 = arith.mulf %0, %0 : vector<8x32xf32>
    %cst = arith.constant dense<0.000000e+00> : vector<8xf32>
    %2 = vector.multi_reduction <add>, %1, %cst [1] : vector<8x32xf32> to vector<8xf32>
    %3 = vector.shape_cast %2 : vector<8xf32> to vector<8x1xf32>
    %cst_1 = arith.constant 3.200000e+01 : f32
    %4 = vector.broadcast %cst_1 : f32 to vector<8x1xf32>
    %5 = arith.divf %3, %4 : vector<8x1xf32>
    %cst_2 = arith.constant 9.99999974E-6 : f32
    %6 = vector.broadcast %cst_2 : f32 to vector<8x1xf32>
    %7 = arith.addf %5, %6 : vector<8x1xf32>
    %8 = math.rsqrt %7 : vector<8x1xf32>
    %9 = vector.broadcast %8 : vector<8x1xf32> to vector<8x32xf32>
    %10 = arith.mulf %0, %9 : vector<8x32xf32>
    %c0_3 = arith.constant 0 : index
    %c0_4 = arith.constant 0 : index
    %11 = vector.load %arg3[%c0_3, %c0_4] : memref<1x32xf32, #tpu.memory_space<vmem>>, vector<1x32xf32>
    %12 = vector.broadcast %11 : vector<1x32xf32> to vector<8x32xf32>
    %13 = arith.mulf %10, %12 : vector<8x32xf32>
    %c0_5 = arith.constant 0 : index
    %c0_6 = arith.constant 0 : index
    %14 = vector.load %arg4[%c0_5, %c0_6] : memref<32x64xf32, #tpu.memory_space<vmem>>, vector<32x64xf32>
    %cst_7 = arith.constant dense<0.000000e+00> : vector<8x64xf32>
    %15 = tpu.matmul %13, %14, %cst_7 {dimension_numbers = #tpu.dot_dimension_numbers<[1], [0], [0], [1], [0, 0, 1, 1], [], []>} : vector<8x32xf32>, vector<32x64xf32>, vector<8x64xf32> -> vector<8x64xf32>
    %c0_8 = arith.constant 0 : index
    %c0_9 = arith.constant 0 : index
    %16 = vector.load %arg5[%c0_8, %c0_9] : memref<1x64xf32, #tpu.memory_space<vmem>>, vector<1x64xf32>
    %17 = vector.broadcast %16 : vector<1x64xf32> to vector<8x64xf32>
    %18 = arith.addf %15, %17 : vector<8x64xf32>
    %19 = vector.extract_strided_slice %18 {offsets = [0, 0], sizes = [8, 32], strides = [1, 1]} : vector<8x64xf32> to vector<8x32xf32>
    %20 = vector.extract_strided_slice %18 {offsets = [0, 32], sizes = [8, 16], strides = [1, 1]} : vector<8x64xf32> to vector<8x16xf32>
    %21 = vector.extract_strided_slice %18 {offsets = [0, 48], sizes = [8, 16], strides = [1, 1]} : vector<8x64xf32> to vector<8x16xf32>
    %c0_10 = arith.constant 0 : index
    %c0_11 = arith.constant 0 : index
    %22 = vector.load %arg6[%c0_10, %c0_11] : memref<8x8xf32, #tpu.memory_space<vmem>>, vector<8x8xf32>
    %23 = vector.extract_strided_slice %22 {offsets = [0, 0], sizes = [8, 4], strides = [1, 1]} : vector<8x8xf32> to vector<8x4xf32>
    %24 = vector.extract_strided_slice %22 {offsets = [0, 4], sizes = [8, 4], strides = [1, 1]} : vector<8x8xf32> to vector<8x4xf32>
    %25 = tpu.concatenate %23, %23, %23, %23 in 1 : vector<8x4xf32>, vector<8x4xf32>, vector<8x4xf32>, vector<8x4xf32> -> vector<8x16xf32>
    %26 = tpu.concatenate %24, %24, %24, %24 in 1 : vector<8x4xf32>, vector<8x4xf32>, vector<8x4xf32>, vector<8x4xf32> -> vector<8x16xf32>
    %27 = tpu.concatenate %23, %23 in 1 : vector<8x4xf32>, vector<8x4xf32> -> vector<8x8xf32>
    %28 = tpu.concatenate %24, %24 in 1 : vector<8x4xf32>, vector<8x4xf32> -> vector<8x8xf32>
    %29 = vector.extract_strided_slice %19 {offsets = [0, 0], sizes = [8, 16], strides = [1, 1]} : vector<8x32xf32> to vector<8x16xf32>
    %30 = vector.extract_strided_slice %19 {offsets = [0, 16], sizes = [8, 16], strides = [1, 1]} : vector<8x32xf32> to vector<8x16xf32>
    %31 = vector.extract_strided_slice %20 {offsets = [0, 0], sizes = [8, 8], strides = [1, 1]} : vector<8x16xf32> to vector<8x8xf32>
    %32 = vector.extract_strided_slice %20 {offsets = [0, 8], sizes = [8, 8], strides = [1, 1]} : vector<8x16xf32> to vector<8x8xf32>
    %33 = arith.mulf %29, %25 : vector<8x16xf32>
    %34 = arith.mulf %30, %26 : vector<8x16xf32>
    %35 = arith.subf %33, %34 : vector<8x16xf32>
    %36 = arith.mulf %30, %25 : vector<8x16xf32>
    %37 = arith.mulf %29, %26 : vector<8x16xf32>
    %38 = arith.addf %36, %37 : vector<8x16xf32>
    %39 = arith.mulf %31, %27 : vector<8x8xf32>
    %40 = arith.mulf %32, %28 : vector<8x8xf32>
    %41 = arith.subf %39, %40 : vector<8x8xf32>
    %42 = arith.mulf %32, %27 : vector<8x8xf32>
    %43 = arith.mulf %31, %28 : vector<8x8xf32>
    %44 = arith.addf %42, %43 : vector<8x8xf32>
    %c0_12 = arith.constant 0 : index
    %c0_13 = arith.constant 0 : index
    %45 = vector.load %arg7[%c0_12, %c0_13] : memref<16x4xf32, #tpu.memory_space<vmem>>, vector<16x4xf32>
    %c0_14 = arith.constant 0 : index
    %c0_15 = arith.constant 0 : index
    %46 = vector.load %arg8[%c0_14, %c0_15] : memref<4x32xf32, #tpu.memory_space<vmem>>, vector<4x32xf32>
    %47 = vector.extract_strided_slice %41 {offsets = [0, 0], sizes = [8, 4], strides = [1, 1]} : vector<8x8xf32> to vector<8x4xf32>
    %48 = tpu.concatenate %47, %47, %47, %47 in 1 : vector<8x4xf32>, vector<8x4xf32>, vector<8x4xf32>, vector<8x4xf32> -> vector<8x16xf32>
    %49 = vector.extract_strided_slice %44 {offsets = [0, 0], sizes = [8, 4], strides = [1, 1]} : vector<8x8xf32> to vector<8x4xf32>
    %50 = tpu.concatenate %49, %49, %49, %49 in 1 : vector<8x4xf32>, vector<8x4xf32>, vector<8x4xf32>, vector<8x4xf32> -> vector<8x16xf32>
    %51 = arith.mulf %35, %48 : vector<8x16xf32>
    %52 = arith.mulf %38, %50 : vector<8x16xf32>
    %53 = arith.addf %51, %52 : vector<8x16xf32>
    %cst_16 = arith.constant dense<0.000000e+00> : vector<8x4xf32>
    %54 = tpu.matmul %53, %45, %cst_16 {dimension_numbers = #tpu.dot_dimension_numbers<[1], [0], [0], [1], [0, 0, 1, 1], [], []>} : vector<8x16xf32>, vector<16x4xf32>, vector<8x4xf32> -> vector<8x4xf32>
    %cst_17 = arith.constant 0.353553385 : f32
    %55 = vector.broadcast %cst_17 : f32 to vector<8x4xf32>
    %56 = arith.mulf %54, %55 : vector<8x4xf32>
    %57 = vector.extract_strided_slice %41 {offsets = [0, 4], sizes = [8, 4], strides = [1, 1]} : vector<8x8xf32> to vector<8x4xf32>
    %58 = tpu.concatenate %57, %57, %57, %57 in 1 : vector<8x4xf32>, vector<8x4xf32>, vector<8x4xf32>, vector<8x4xf32> -> vector<8x16xf32>
    %59 = vector.extract_strided_slice %44 {offsets = [0, 4], sizes = [8, 4], strides = [1, 1]} : vector<8x8xf32> to vector<8x4xf32>
    %60 = tpu.concatenate %59, %59, %59, %59 in 1 : vector<8x4xf32>, vector<8x4xf32>, vector<8x4xf32>, vector<8x4xf32> -> vector<8x16xf32>
    %61 = arith.mulf %35, %58 : vector<8x16xf32>
    %62 = arith.mulf %38, %60 : vector<8x16xf32>
    %63 = arith.addf %61, %62 : vector<8x16xf32>
    %cst_18 = arith.constant dense<0.000000e+00> : vector<8x4xf32>
    %64 = tpu.matmul %63, %45, %cst_18 {dimension_numbers = #tpu.dot_dimension_numbers<[1], [0], [0], [1], [0, 0, 1, 1], [], []>} : vector<8x16xf32>, vector<16x4xf32>, vector<8x4xf32> -> vector<8x4xf32>
    %cst_19 = arith.constant 0.353553385 : f32
    %65 = vector.broadcast %cst_19 : f32 to vector<8x4xf32>
    %66 = arith.mulf %64, %65 : vector<8x4xf32>
    %67 = arith.maximumf %56, %66 : vector<8x4xf32>
    %68 = arith.subf %56, %67 : vector<8x4xf32>
    %69 = math.exp %68 : vector<8x4xf32>
    %70 = arith.subf %66, %67 : vector<8x4xf32>
    %71 = math.exp %70 : vector<8x4xf32>
    %72 = arith.addf %69, %71 : vector<8x4xf32>
    %73 = tpu.reciprocal %72 {approx = true} : vector<8x4xf32> -> vector<8x4xf32>
    %74 = arith.mulf %69, %73 : vector<8x4xf32>
    %cst_20 = arith.constant dense<0.000000e+00> : vector<8x32xf32>
    %75 = tpu.matmul %74, %46, %cst_20 {dimension_numbers = #tpu.dot_dimension_numbers<[1], [0], [0], [1], [0, 0, 1, 1], [], []>} : vector<8x4xf32>, vector<4x32xf32>, vector<8x32xf32> -> vector<8x32xf32>
    %76 = vector.extract_strided_slice %21 {offsets = [0, 0], sizes = [8, 8], strides = [1, 1]} : vector<8x16xf32> to vector<8x8xf32>
    %77 = tpu.concatenate %76, %76, %76, %76 in 1 : vector<8x8xf32>, vector<8x8xf32>, vector<8x8xf32>, vector<8x8xf32> -> vector<8x32xf32>
    %78 = arith.mulf %75, %77 : vector<8x32xf32>
    %79 = arith.mulf %71, %73 : vector<8x4xf32>
    %cst_21 = arith.constant dense<0.000000e+00> : vector<8x32xf32>
    %80 = tpu.matmul %79, %46, %cst_21 {dimension_numbers = #tpu.dot_dimension_numbers<[1], [0], [0], [1], [0, 0, 1, 1], [], []>} : vector<8x4xf32>, vector<4x32xf32>, vector<8x32xf32> -> vector<8x32xf32>
    %81 = vector.extract_strided_slice %21 {offsets = [0, 8], sizes = [8, 8], strides = [1, 1]} : vector<8x16xf32> to vector<8x8xf32>
    %82 = tpu.concatenate %81, %81, %81, %81 in 1 : vector<8x8xf32>, vector<8x8xf32>, vector<8x8xf32>, vector<8x8xf32> -> vector<8x32xf32>
    %83 = arith.mulf %80, %82 : vector<8x32xf32>
    %84 = arith.addf %78, %83 : vector<8x32xf32>
    %85 = vector.extract_strided_slice %84 {offsets = [0, 0], sizes = [8, 8], strides = [1, 1]} : vector<8x32xf32> to vector<8x8xf32>
    %c0_22 = arith.constant 0 : index
    %c0_23 = arith.constant 0 : index
    %c0_24 = arith.constant 0 : index
    %86 = vector.load %arg9[%c0_22, %c0_23, %c0_24] : memref<4x8x8xf32, #tpu.memory_space<vmem>>, vector<1x8x8xf32>
    %87 = vector.shape_cast %86 : vector<1x8x8xf32> to vector<8x8xf32>
    %88 = vector.shape_cast %85 : vector<8x8xf32> to vector<1x8x8xf32>
    tpu.vector_store %arg9[%c0_22, %c0_23, %c0_24], %88 {strides = array<i32>} : memref<4x8x8xf32, #tpu.memory_space<vmem>>, vector<1x8x8xf32>,
    %89 = vector.extract_strided_slice %84 {offsets = [0, 8], sizes = [8, 8], strides = [1, 1]} : vector<8x32xf32> to vector<8x8xf32>
    %c1 = arith.constant 1 : index
    %c0_25 = arith.constant 0 : index
    %c0_26 = arith.constant 0 : index
    %90 = vector.load %arg9[%c1, %c0_25, %c0_26] : memref<4x8x8xf32, #tpu.memory_space<vmem>>, vector<1x8x8xf32>
    %91 = vector.shape_cast %90 : vector<1x8x8xf32> to vector<8x8xf32>
    %92 = vector.shape_cast %89 : vector<8x8xf32> to vector<1x8x8xf32>
    tpu.vector_store %arg9[%c1, %c0_25, %c0_26], %92 {strides = array<i32>} : memref<4x8x8xf32, #tpu.memory_space<vmem>>, vector<1x8x8xf32>,
    %93 = vector.extract_strided_slice %84 {offsets = [0, 16], sizes = [8, 8], strides = [1, 1]} : vector<8x32xf32> to vector<8x8xf32>
    %c2 = arith.constant 2 : index
    %c0_27 = arith.constant 0 : index
    %c0_28 = arith.constant 0 : index
    %94 = vector.load %arg9[%c2, %c0_27, %c0_28] : memref<4x8x8xf32, #tpu.memory_space<vmem>>, vector<1x8x8xf32>
    %95 = vector.shape_cast %94 : vector<1x8x8xf32> to vector<8x8xf32>
    %96 = vector.shape_cast %93 : vector<8x8xf32> to vector<1x8x8xf32>
    tpu.vector_store %arg9[%c2, %c0_27, %c0_28], %96 {strides = array<i32>} : memref<4x8x8xf32, #tpu.memory_space<vmem>>, vector<1x8x8xf32>,
    %97 = vector.extract_strided_slice %84 {offsets = [0, 24], sizes = [8, 8], strides = [1, 1]} : vector<8x32xf32> to vector<8x8xf32>
    %c3 = arith.constant 3 : index
    %c0_29 = arith.constant 0 : index
    %c0_30 = arith.constant 0 : index
    %98 = vector.load %arg9[%c3, %c0_29, %c0_30] : memref<4x8x8xf32, #tpu.memory_space<vmem>>, vector<1x8x8xf32>
    %99 = vector.shape_cast %98 : vector<1x8x8xf32> to vector<8x8xf32>
    %100 = vector.shape_cast %97 : vector<8x8xf32> to vector<1x8x8xf32>
    tpu.vector_store %arg9[%c3, %c0_29, %c0_30], %100 {strides = array<i32>} : memref<4x8x8xf32, #tpu.memory_space<vmem>>, vector<1x8x8xf32>,
    return
  }
  func.func @transform_0(%arg0: i32, %arg1: i32) -> (i32, i32) {
    %c1_i32 = arith.constant 1 : i32
    %0 = arith.muli %arg0, %c1_i32 : i32
    %1 = arith.addi %0, %arg1 : i32
    %c0_i32 = arith.constant 0 : i32
    %c0_i32_0 = arith.constant 0 : i32
    return %1, %c0_i32 : i32, i32
  }
  func.func @transform_1(%arg0: i32, %arg1: i32) -> (i32, i32) {
    %c0_i32 = arith.constant 0 : i32
    %c0_i32_0 = arith.constant 0 : i32
    %c0_i32_1 = arith.constant 0 : i32
    return %c0_i32, %c0_i32_0 : i32, i32
  }
  func.func @transform_2(%arg0: i32, %arg1: i32) -> (i32, i32) {
    %c0_i32 = arith.constant 0 : i32
    %c0_i32_0 = arith.constant 0 : i32
    %c0_i32_1 = arith.constant 0 : i32
    return %c0_i32, %c0_i32_0 : i32, i32
  }
  func.func @transform_3(%arg0: i32, %arg1: i32) -> (i32, i32) {
    %c0_i32 = arith.constant 0 : i32
    %c0_i32_0 = arith.constant 0 : i32
    %c0_i32_1 = arith.constant 0 : i32
    return %c0_i32, %c0_i32_0 : i32, i32
  }
  func.func @transform_4(%arg0: i32, %arg1: i32) -> (i32, i32) {
    %c0_i32 = arith.constant 0 : i32
    %c0_i32_0 = arith.constant 0 : i32
    return %arg1, %c0_i32 : i32, i32
  }
  func.func @transform_5(%arg0: i32, %arg1: i32) -> (i32, i32) {
    %c0_i32 = arith.constant 0 : i32
    %c0_i32_0 = arith.constant 0 : i32
    %c0_i32_1 = arith.constant 0 : i32
    return %c0_i32, %c0_i32_0 : i32, i32
  }
  func.func @transform_6(%arg0: i32, %arg1: i32) -> (i32, i32) {
    %c0_i32 = arith.constant 0 : i32
    %c0_i32_0 = arith.constant 0 : i32
    %c0_i32_1 = arith.constant 0 : i32
    return %c0_i32, %c0_i32_0 : i32, i32
  }
  func.func @transform_7(%arg0: i32, %arg1: i32) -> (i32, i32, i32) {
    %c0_i32 = arith.constant 0 : i32
    %c0_i32_0 = arith.constant 0 : i32
    return %arg0, %arg1, %c0_i32 : i32, i32, i32
  }
}

</mosaic_0001>

<bundles_post_ra>
// kernel: tpu_custom_call.1
= control target key start
LH: loop header
LB: loop body
LE: loop exit
PB: predicated region body
PF: predicated region fallthrough
CT: control target
= control target key end

     0   :  { %6 = vsyncpa [#allocation3], 0  ;;  %s305_s0 = inlined_call_operand.hbm [shape: f32[8,128], index: 0, kind: input, shape index: {}]   ;;  %s306_s1 = inlined_call_operand.hbm [shape: f32[8,128], index: 1, kind: output, shape index: {}]  }
   0x1   :  { %7 = vsyncpa [#allocation4], 0  ;;  %s258_s6 = smov 0  }
   0x2 LB: > { %s145_s7 = sadd.s32 4294967295, %s244_s6   ;;  %p146_p0 = scmp.ge.s32.totalorder %s244_s6, 1  ;;  %s244_s6 = sphi %s258_s6, %s13_s6  }
   0x3   : > { %p60_p1 = scmp.lt.s32.totalorder %s244_s6, 3  ;;  %p270_p3 = scmp.eq.s32.totalorder %s145_s7, 0 }
   0x4   : > { %s246_s10 = smov [#allocation2]  }
   0x5   : > { %p266_p2 = pnand %p146_p0, %p60_p1  ;;  %s73_s11 = sshll.u32 %s246_s10, 4  ;;  %s74_s11 = int_to_ptr.vmem [resolvable:$true] %s73_s11 }
   0x6   : > { %s191_s12 = scalar_lea.vmem %s74_s11, 128  ;;  %p199_p10 = scmp.lt.s32.totalorder %s74_s11, %s74_s11 }
   0x7   : > { %p162_p4 = pneg %p266_p2  ;;  %p192_p7 = scmp.ne.s32.totalorder %s74_s11, %s191_s12 }
   0x8   : > { %p200_p11 = scmp.lt.s32.totalorder %s191_s12, %s191_s12 }
   0x9   : > { %p163_p5 = pnand %p270_p3, %p162_p4 }
   0xa   : > { %p201_p12 = por %p200_p11, %p199_p10 }
   0xb   : > { %p182_p6 = pneg %p163_p5 }
   0xd   : > { %p194_p8 = pnand %p192_p7, %p182_p6 }
   0xf   : > { %p195_p9 = pneg %p194_p8 }
  0x11   : > { %p202_p13 = pnand %p201_p12, %p195_p9 }
  0x13   : > { %205 = shalt.err (!%p202_p13)
}
  0x14   : > { %165 = dma.hbm_to_vmem [thread:$0]  (!%p163_p5), %s305_s0, 128, %s74_s11, [#allocation3]  }
  0x15   : > { %86 = sbr.rel (%p266_p2) target bundleno = 42 (0x2a), region = 24 }
  0x1a   : > { %235 = dma.done.wait (%p270_p3), [#allocation3], 128  }
  0x1b   : > { %237 = vsyncadd (%p270_p3), [#allocation3], 4294967168  ;;  %s247_s15 = smov [#allocation5]   ;;  %v96_v0 = vld [vmem:[#allocation2] sm:$0xff]  ;;  %p287_p0 = scmp.eq.s32.totalorder %s145_s7, 1 }
  0x1c   : > { %s106_s16 = sshll.u32 %s247_s15, 4  ;;  %v97_v1 = vadd.f32 1.0, %v96_v0  ;;  %s107_s16 = int_to_ptr.vmem [resolvable:$true] %s106_s16 }
  0x1d   : > { %s206_s18 = scalar_lea.vmem %s107_s16, 128  ;;  %p213_p5 = scmp.lt.s32.totalorder %s107_s16, %s107_s16 }
  0x1e   : > { %98 = vst [vmem:[#allocation5] sm:$0xff] %v97_v1  ;;  %p207_p1 = scmp.ne.s32.totalorder %s107_s16, %s206_s18  ;;  %p214_p6 = scmp.lt.s32.totalorder %s206_s18, %s206_s18 }
  0x20   : > { %p208_p2 = pnand %p207_p1, %p287_p0  ;;  %p215_p7 = por %p214_p6, %p213_p5 }
  0x22   : > { %p209_p4 = pneg %p208_p2 }
  0x24   : > { %p216_p3 = pnand %p215_p7, %p209_p4 }
  0x26   : > { %219 = shalt.err (!%p216_p3)
}
  0x27   : > { %159 = dma.vmem_to_hbm [thread:$0]  (%p287_p0), %s107_s16, 128, %s306_s1, [#allocation4]  }
  0x28   : > { %239 = dma.done.wait (%p287_p0), [#allocation4], 128  }
  0x29   : > { %241 = vsyncadd (%p287_p0), [#allocation4], 4294967168 }
  0x2a PF: > { %s13_s6 = sadd.s32 1, %s244_s6  }
  0x2b   : > { %p10_p8 = scmp.ge.s32.totalorder %s13_s6, 4  }
  0x2d   :  { %12 = sbr.rel (!%p10_p8) target bundleno = 2 (0x2), region = 53 }
  0x32   :  { %119 = vsyncpa [#allocation3], 1 }
  0x33   :  { %121 = vsyncpa [#allocation3 + $0x1], 1 }
  0x34   :  { %122 = vsyncpa [#allocation4], 1 }
  0x35   :  { %124 = vsyncpa [#allocation4 + $0x1], 1 }

// kernel: transformer_block_pallas.3
= control target key start
LH: loop header
LB: loop body
LE: loop exit
PB: predicated region body
PF: predicated region fallthrough
CT: control target
= control target key end

     0   :  { %vm50_vm0 = vcmask 261120   ;;  %s660_s0 = inlined_call_operand.vmem [shape: f32[16,32], index: 0, kind: input, shape index: {}]   ;;  %s661_s1 = inlined_call_operand.vmem [shape: f32[16,32], index: 1, kind: input, shape index: {}]   ;;  %s662_s2 = inlined_call_operand.vmem [shape: f32[32,32], index: 2, kind: input, shape index: {}]   ;;  %s663_s3 = inlined_call_operand.vmem [shape: f32[1,32], index: 3, kind: input, shape index: {}]   ;;  %s664_s4 = inlined_call_operand.vmem [shape: f32[1,32], index: 4, kind: input, shape index: {}]   ;;  %s665_s5 = inlined_call_operand.vmem [shape: f32[32,128], index: 5, kind: input, shape index: {}]   ;;  %s666_s6 = inlined_call_operand.vmem [shape: f32[1,128], index: 6, kind: input, shape index: {}]   ;;  %s667_s7 = inlined_call_operand.vmem [shape: f32[64,32], index: 7, kind: input, shape index: {}]   ;;  %s668_s8 = inlined_call_operand.vmem [shape: f32[1,32], index: 8, kind: input, shape index: {}]   ;;  %s669_s9 = inlined_call_operand.hbm [shape: f32[16,32], index: 9, kind: output, shape index: {}]  }
   0x1   :  { %v42_v0 = vld [vmem:[%s662_s2 + $0x18] sm:$0xff]  ;;  %v41_v1 = vld [vmem:[%s662_s2 + $0x10] sm:$0xff]  ;;  %v37_v2 = vld [vmem:[%s660_s0] sm:$0xff] }
   0x2   :  { %440 = vmatprep.subr.mxu1 %v42_v0  ;;  %v40_v3 = vld [vmem:[%s662_s2 + $0x8] sm:$0xff]  ;;  %448 = vmatprep.mubr.msk.f32.mxu1 %vm50_vm0, %v37_v2 }
   0x3   :  { %441 = vmatpush3.msra.mxu1 %v42_v0 }
   0x4   :  { %14 = vsyncpa [#allocation4], 0  ;;  %442 = vmatprep.subr.mxu1 %v41_v1  ;;  %v39_v4 = vld [vmem:[%s662_s2] sm:$0xff]  ;;  %v38_v5 = vld [vmem:[%s660_s0 + $0x8] sm:$0xff]  ;;  %vm304_vm1 = vcmask 523264  }
   0x5   :  { %443 = vmatpush3.msra.mxu1 %v41_v1  ;;  %v406_v6 = vld [vmem:[%s663_s3] ss:$0 sm:$0xff]  ;;  %v133_v8 = vld [vmem:[%s661_s1 + $0x8] sm:$0xff]  ;;  %v180_v22 = vld [vmem:[%s665_s5 + $0x18] sm:$0xff]  ;;  %s519_s3 = smov 64  }
   0x6   :  { %444 = vmatprep.subr.mxu1 %v40_v3  ;;  %v410_v10 = vld [vmem:[%s668_s8] ss:$0 sm:$0xff]  ;;  %v179_v23 = vld [vmem:[%s665_s5 + $0x10] sm:$0xff]  ;;  %v178_v24 = vld [vmem:[%s665_s5 + $0x8] sm:$0xff] }
   0x7   :  { %445 = vmatpush3.msra.mxu1 %v40_v3  ;;  %v132_v12 = vld [vmem:[%s661_s1] sm:$0xff]  ;;  %v303_v41 = vld [vmem:[%s667_s7 + $0x38] sm:$0xff]  ;;  %v302_v42 = vld [vmem:[%s667_s7 + $0x30] sm:$0xff] }
   0x8   :  { %446 = vmatprep.subr.mxu1 %v39_v4  ;;  %v177_v25 = vld [vmem:[%s665_s5] sm:$0xff]  ;;  %462 = vmatprep.subr.mxu0 %v303_v41  ;;  %v301_v43 = vld [vmem:[%s667_s7 + $0x28] sm:$0xff]  ;;  %v299_v45 = vld [vmem:[%s667_s7 + $0x18] sm:$0xff] }
   0x9   :  { %447 = vmatpush3.msra.mxu1 %v39_v4  ;;  %v409_v33 = vld [vmem:[%s664_s4] ss:$0 sm:$0xff]  ;;  %463 = vmatpush3.msra.mxu0 %v303_v41  ;;  %v298_v46 = vld [vmem:[%s667_s7 + $0x10] sm:$0xff]  ;;  %v297_v47 = vld [vmem:[%s667_s7 + $0x8] sm:$0xff] }
   0xa   :  { %449 = vmatmul.mubr.msk.f32.vlgmr.msra.gmra.mxu1 %vm50_vm0, %v38_v5  ;;  %451 = vmatprep.subr.mxu1 %v180_v22  ;;  %v300_v44 = vld [vmem:[%s667_s7 + $0x20] sm:$0xff] }
   0xb   :  { %452 = vmatpush3.msra.mxu1 %v180_v22  ;;  %464 = vmatprep.subr.mxu0 %v302_v42  ;;  %v296_v48 = vld [vmem:[%s667_s7] sm:$0xff] }
   0xc   :  { %453 = vmatprep.subr.mxu1 %v179_v23  ;;  %465 = vmatpush3.msra.mxu0 %v302_v42  ;;  %v411_v50 = vld [vmem:[%s666_s6] ss:$0 sm:$0xff]  ;;  %s520_s6 = smov [#allocation3]  }
   0xd   :  { %454 = vmatpush3.msra.mxu1 %v179_v23  ;;  %466 = vmatprep.subr.mxu0 %v301_v43  ;;  %s395_s7 = sshll.u32 %s520_s6, 4  ;;  %s396_s7 = int_to_ptr.vmem [resolvable:$true] %s395_s7 }
   0xe   :  { %455 = vmatprep.subr.mxu1 %v178_v24  ;;  %467 = vmatpush3.msra.mxu0 %v301_v43  ;;  %s497_s8 = scalar_lea.vmem %s396_s7, 256  ;;  %p502_p1 = scmp.lt.s32.totalorder %s396_s7, %s396_s7 }
   0xf   :  { %456 = vmatpush3.msra.mxu1 %v178_v24  ;;  %468 = vmatprep.subr.mxu0 %v300_v44  ;;  %p498_p0 = scmp.ne.s32.totalorder %s396_s7, %s497_s8  ;;  %p503_p2 = scmp.lt.s32.totalorder %s497_s8, %s497_s8 }
  0x10   :  { %457 = vmatprep.subr.mxu1 %v177_v25  ;;  %469 = vmatpush3.msra.mxu0 %v300_v44 }
  0x11   :  { %458 = vmatpush3.msra.mxu1 %v177_v25  ;;  %470 = vmatprep.subr.mxu0 %v299_v45  ;;  %p504_p3 = por %p503_p2, %p502_p1 }
  0x12   :  { %471 = vmatpush3.msra.mxu0 %v299_v45 }
  0x13   :  { %472 = vmatprep.subr.mxu0 %v298_v46  ;;  %p505_p4 = pnand %p504_p3, %p498_p0 }
  0x14   :  { %473 = vmatpush3.msra.mxu0 %v298_v46 }
  0x15   :  { %474 = vmatprep.subr.mxu0 %v297_v47 }
  0x16   :  { %475 = vmatpush3.msra.mxu0 %v297_v47 }
  0x17   :  { %476 = vmatprep.subr.mxu0 %v296_v48 }
  0x18   :  { %477 = vmatpush3.msra.mxu0 %v296_v48 }
  0xca   :  { %v450_v7 = vpop.f32.mrf.mxu1 }
  0xcb   :  { %v129_v9 = vadd.f32 %v450_v7, %v406_v6 }
  0xcc   :  { %v123_v11 = vpop.f32.mrf.mxu1 }
  0xcd   :  { %v135_v13 = vadd.f32 %v133_v8, %v129_v9  ;;  %v124_v14 = vadd.f32 %v406_v6, %v123_v11 }
  0xcf   :  { %v172_v15 = vadd.f32 %v410_v10, %v135_v13  ;;  %v134_v16 = vadd.f32 %v132_v12, %v124_v14  ;;  %v137_v20 = vmul.f32 %v135_v13, %v135_v13 }
  0xd1   :  { %174 = vst.msk [vmem:[#allocation3 + $0x8] sm:$0xff] %vm50_vm0, %v172_v15  ;;  %v171_v17 = vadd.f32 %v410_v10, %v134_v16  ;;  %v136_v18 = vmul.f32 %v134_v16, %v134_v16  ;;  %v141_v21 = vsel %vm50_vm0, %v137_v20, 0.0 }
  0xd3   :  { %173 = vst.msk [vmem:[#allocation3] sm:$0xff] %vm50_vm0, %v171_v17  ;;  %v138_v19 = vsel %vm50_vm0, %v136_v18, 0.0 }
  0xd4   :  { %139 = vadd.xlane.f32.xlu0 %v138_v19 }
  0xd8   :  { %142 = vadd.xlane.f32.xlu0 %v141_v21  ;;  %v285_v4 = vld [vmem:[#allocation3 + $0x8] sm:$0xff] }
  0xda   :  { %v284_v7 = vld [vmem:[#allocation3] sm:$0xff] }
 0x15d   :  { %v140_v26 = vpop.xlane.xlu0 %139 }
 0x15e   :  { %v145_v27 = vmul.f32 0.03125, %v140_v26 }
 0x160   :  { %v147_v28 = vadd.f32 1e-05, %v145_v27 }
 0x161   :  { %v143_v29 = vpop.xlane.xlu0 %142 }
 0x162   :  { %485 = vrsqrt.f32 %v147_v28  ;;  %v146_v30 = vmul.f32 0.03125, %v143_v29 }
 0x164   :  { %v148_v31 = vadd.f32 1e-05, %v146_v30 }
 0x166   :  { %487 = vrsqrt.f32 %v148_v31 }
 0x16f   :  { %v486_v32 = vpop.eup %485 }
 0x170   :  { %v151_v34 = vmul.f32 %v486_v32, %v134_v16 }
 0x172   :  { %v160_v35 = vmul.f32 %v409_v33, %v151_v34 }
 0x173   :  { %v488_v36 = vpop.eup %487 }
 0x174   :  { %162 = vst.msk [vmem:[#allocation2] sm:$0xff] %vm50_vm0, %v160_v35  ;;  %v152_v37 = vmul.f32 %v488_v36, %v135_v13 }
 0x176   :  { %v161_v38 = vmul.f32 %v409_v33, %v152_v37 }
 0x178   :  { %163 = vst.msk [vmem:[#allocation2 + $0x8] sm:$0xff] %vm50_vm0, %v161_v38 }
 0x17b   :  { %v175_v39 = vld [vmem:[#allocation2] sm:$0xff] }
 0x17c   :  { %459 = vmatprep.mubr.msk.f32.mxu1 %vm50_vm0, %v175_v39 }
 0x17f   :  { %v176_v40 = vld [vmem:[#allocation2 + $0x8] sm:$0xff] }
 0x180   :  { %460 = vmatmul.mubr.msk.f32.vlgmr.msra.gmra.mxu1 %vm50_vm0, %v176_v40 }
 0x240   :  { %v461_v49 = vpop.f32.mrf.mxu1 }
 0x241   :  { %v267_v53 = vadd.f32 %v461_v49, %v411_v50 }
 0x242   :  { %v261_v51 = vpop.f32.mrf.mxu1 }
 0x243   :  { %v262_v52 = vadd.f32 %v411_v50, %v261_v51  ;;  %v415_v55 = vmul.f32 -1.442695, %v267_v53 }
 0x245   :  { %288 = vrot.lane.b32.xlu1 %v262_v52, %s519_s3  ;;  %v414_v54 = vmul.f32 -1.442695, %v262_v52 }
 0x247   :  { %489 = vpow2.f32 %v414_v54 }
 0x248   :  { %491 = vpow2.f32 %v415_v55 }
 0x249   :  { %290 = vrot.lane.b32.xlu1 %v267_v53, %s519_s3 }
 0x254   :  { %v490_v56 = vpop.eup %489 }
 0x255   :  { %v276_v57 = vadd.f32 1.0, %v490_v56  ;;  %v492_v58 = vpop.eup %491 }
 0x256   :  { %v277_v59 = vadd.f32 1.0, %v492_v58 }
 0x257   :  { %493 = vrcp.f32 %v276_v57 }
 0x258   :  { %495 = vrcp.f32 %v277_v59 }
 0x264   :  { %v494_v60 = vpop.eup %493 }
 0x265   :  { %v282_v61 = vmul.f32 %v494_v60, %v262_v52  ;;  %v496_v62 = vpop.eup %495 }
 0x266   :  { %v283_v1 = vmul.f32 %v496_v62, %v267_v53 }
 0x2b7   :  { %v289_v63 = vpop.permute.xlu1 %288 }
 0x2b8   :  { %v294_v0 = vmul.f32 %v289_v63, %v282_v61 }
 0x2ba   :  { %478 = vmatprep.mubr.msk.f32.mxu0 %vm304_vm1, %v294_v0 }
 0x2bb   :  { %v291_v2 = vpop.permute.xlu1 %290 }
 0x2bc   :  { %v295_v3 = vmul.f32 %v291_v2, %v283_v1 }
 0x2be   :  { %479 = vmatmul.mubr.msk.f32.vlgmr.msra.gmra.mxu0 %vm304_vm1, %v295_v3 }
 0x37e   :  { %v480_v5 = vpop.f32.mrf.mxu0 }
 0x37f   :  { %v387_v6 = vadd.f32 %v480_v5, %v285_v4 }
 0x380   :  { %v377_v8 = vpop.f32.mrf.mxu0 }
 0x381   :  { %389 = vst.msk [vmem:[#allocation3 + $0x8] sm:$0xff] %vm50_vm0, %v387_v6  ;;  %v386_v9 = vadd.f32 %v377_v8, %v284_v7 }
 0x383   :  { %388 = vst.msk [vmem:[#allocation3] sm:$0xff] %vm50_vm0, %v386_v9 }
 0x384   :  { %508 = shalt.err (!%p505_p4)
}
 0x385   :  { %s521_s1 = smov 128   ;;  %s522_s27 = smov 8  }
 0x386   :  { %401 = dma.vmem_to_hbm [thread:$0]  %s396_s7, 256, %s669_s9, [#allocation4], %s521_s1, %s521_s1, %s522_s27  }
 0x387   :  { %517 = dma.done.wait [#allocation4], 256  }
 0x388   :  { %518 = vsyncadd [#allocation4], 4294967040 }
 0x389   :  { %405 = vsyncpa [#allocation4], 1 }

// kernel: transformer_block_pallas.2
= control target key start
LH: loop header
LB: loop body
LE: loop exit
PB: predicated region body
PF: predicated region fallthrough
CT: control target
= control target key end

     0   :  { %s1218_s24 = smov 0   ;;  %s1220_s25 = smov 0   ;;  %s1373_s0 = inlined_call_operand.vmem [shape: f32[16,32], index: 0, kind: input, shape index: {}]   ;;  %s1374_s1 = inlined_call_operand.vmem [shape: f32[1,32], index: 1, kind: input, shape index: {}]   ;;  %s1375_s2 = inlined_call_operand.vmem [shape: f32[32,64], index: 2, kind: input, shape index: {}]   ;;  %s1376_s3 = inlined_call_operand.vmem [shape: f32[1,64], index: 3, kind: input, shape index: {}]   ;;  %s1377_s4 = inlined_call_operand.vmem [shape: f32[8,8], index: 4, kind: input, shape index: {}]   ;;  %s1378_s5 = inlined_call_operand.vmem [shape: f32[16,4], index: 5, kind: input, shape index: {}]   ;;  %s1379_s6 = inlined_call_operand.vmem [shape: f32[4,32], index: 6, kind: input, shape index: {}]   ;;  %s1380_s7 = inlined_call_operand.vmem [shape: f32[8,8,8], index: 7, kind: output, shape index: {}]  }
   0x1   :  { %s1222_s26 = smov 0  }
   0x2 LB: > { %s29_s27 = sadd.s32 1, %s1152_s25  ;;  %p1014_p0 = scmp.ge.s32.totalorder %s1156_s26, 1  ;;  %s1156_s26 = sphi %s1222_s26, %s17_s26   ;;  %s1152_s25 = sphi %s1220_s25, %s1382_s25   ;;  %s1148_s24 = sphi %s1218_s24, %s1381_s24  }
   0x3   : > { %p31_p1 = scmp.ge.s32.totalorder %s29_s27, 2  ;;  %p263_p2 = scmp.lt.s32.totalorder %s1156_s26, 3 }
   0x5   : > { %s1384_s27 = smov (%p31_p1, %s29_s27), 0  ;;  %p264_p3 = pnand %p1014_p0, %p263_p2 }
   0x6   : > { %p303_p4 = scmp.lt.s32.totalorder (!%p264_p3), %s1148_s24, 1  ;;  %s1158_s8 = smov (!%p264_p3), 4  }
   0x7   : > { %267 = sbr.rel (%p264_p3) target bundleno = 1405 (0x57d), region = 48  ;;  %s1161_s21 = smov (!%p264_p3), 124  }
   0x8   : > { %s1162_s22 = smov (!%p264_p3), 32   ;;  %s1163_s23 = smov (!%p264_p3), 40  }
   0x9   : > { %s1165_s10 = smov (!%p264_p3), 12   ;;  %s1166_s11 = smov (!%p264_p3), 92  }
   0xa   : > { %s1168_s13 = smov (!%p264_p3), 100   ;;  %s1169_s14 = smov (!%p264_p3), 96  }
   0xb   : > { %s1170_s15 = smov (!%p264_p3), 84   ;;  %s1171_s16 = smov (!%p264_p3), 120  }
   0xc   : > { %v424_v0 = vld [vmem:[%s1377_s4] sm:$0xff]  ;;  %s304_s30 = scalar_select %p303_p4, %s1148_s24, 1  ;;  %vm323_vm0 = vcmask 261120   ;;  %v343_v4 = vld [vmem:[%s1375_s2 + $0x18] sm:$0xff]  ;;  %v1159_v5 = vmov 0.0   ;;  %v342_v6 = vld [vmem:[%s1375_s2 + $0x10] sm:$0xff] }
   0xd   : > { %426 = vrot.lane.b32.xlu1 %v424_v0, %s1158_s8  ;;  %1047 = vmatprep.subr.mxu0 %v1159_v5  ;;  %vm1160_vm1 = vmmov 0   ;;  %v341_v7 = vld [vmem:[%s1375_s2 + $0x8] sm:$0xff]  ;;  %v340_v8 = vld [vmem:[%s1375_s2] sm:$0xff]  ;;  %vm435_vm2 = vcmask 31744   ;;  %vm437_vm3 = vcmask 64512   ;;  %vm439_vm4 = vcmask 97280  }
   0xe   : > { %s1015_s9 = sshll.u32 %s304_s30, 3  ;;  %1055 = vmatprep.mubr.msk.f32.mxu0 %vm1160_vm1, %v1159_v5  ;;  %1048 = vmatpush3.msra.mxu0 %v343_v4  ;;  %v1018_v17 = vld [vmem:[%s1374_s1] ss:$0 sm:$0xff]  ;;  %s1172_s17 = smov 16   ;;  %v498_v53 = vld [vmem:[%s1378_s5 + $0x8] sm:$0xff]  ;;  %vm543_vm5 = vcmask 130048  }
   0xf   : > { %s306_s12 = scalar_lea.vmem %s1373_s0, %s1015_s9  ;;  %1058 = vmatprep.subr.mxu1 %v1159_v5  ;;  %1049 = vmatprep.subr.mxu0 %v1159_v5  ;;  %v1019_v20 = vld [vmem:[%s1376_s3] ss:$0 sm:$0xff]  ;;  %s1164_s9 = smov 8   ;;  %vm728_vm6 = vcmask 1043456   ;;  %vm817_vm7 = vcmask 195584  }
  0x10   : > { %v321_v1 = vld [vmem:[%s306_s12] sm:$0xff]  ;;  %1062 = vmatprep.mubr.msk.f32.mxu1 %vm1160_vm1, %v1159_v5  ;;  %1050 = vmatpush3.msra.mxu0 %v342_v6  ;;  %s1167_s12 = smov 88   ;;  %s1173_s20 = smov 112  }
  0x11   : > { %v322_v2 = vmul.f32 %v321_v1, %v321_v1  ;;  %1051 = vmatprep.subr.mxu0 %v1159_v5  ;;  %1059 = vmatpush3.msra.mxu1 %v498_v53  ;;  %v497_v57 = vld [vmem:[%s1378_s5] sm:$0xff]  ;;  %s1176_s29 = smov 80   ;;  %s1177_s30 = smov 72  }
  0x12   : > { %1052 = vmatpush3.msra.mxu0 %v341_v7  ;;  %1060 = vmatprep.subr.mxu1 %v1159_v5 }
  0x13   : > { %v324_v3 = vsel %vm323_vm0, %v322_v2, 0.0  ;;  %1053 = vmatprep.subr.mxu0 %v1159_v5  ;;  %1061 = vmatpush3.msra.mxu1 %v497_v57 }
  0x14   : > { %325 = vadd.xlane.f32.xlu0 %v324_v3  ;;  %1054 = vmatpush3.msra.mxu0 %v340_v8 }
  0x15   : > { %1072 = vmatprep.subr.mxu0 %v1159_v5  ;;  %1065 = vmatprep.subr.mxu1 %v1159_v5 }
  0x2a   : > { %441 = vrot.lane.b32.xlu0 %v424_v0, %s1161_s21  ;;  %s1174_s21 = smov 104  }
  0x7f   : > { %v427_v13 = vpop.permute.xlu1 %426 }
  0x80   : > { %v436_v15 = vsel %vm435_vm2, %v424_v0, %v427_v13 }
  0x9d   : > { %v326_v9 = vpop.xlane.xlu0 %325 }
  0x9e   : > { %v328_v10 = vmul.f32 0.03125, %v326_v9 }
  0xa0   : > { %v329_v11 = vadd.f32 1e-05, %v328_v10 }
  0xa1   : > { %v442_v12 = vpop.permute.xlu0 %441 }
  0xa2   : > { %1126 = vrsqrt.f32 %v329_v11  ;;  %v444_v14 = vsel %vm435_vm2, %v442_v12, %v424_v0 }
  0xa3   : > { %488 = vrot.lane.b32.xlu1 %v444_v14, %s1162_s22  ;;  %v445_v32 = vsel %vm437_vm3, %v444_v14, %v427_v13 }
  0xa7   : > { %484 = vrot.lane.b32.xlu1 %v436_v15, %s1163_s23 }
  0xaf   : > { %v1127_v16 = vpop.eup %1126 }
  0xb0   : > { %v331_v18 = vmul.f32 %v1127_v16, %v321_v1 }
  0xb2   : > { %v339_v19 = vmul.f32 %v1018_v17, %v331_v18 }
  0xb4   : > { %1056 = vmatmul.mubr.msk.f32.vlgmr.msra.gmra.mxu0 %vm323_vm0, %v339_v19 }
  0xb5   : > { %1074 = vmatprep.mubr.msk.f32.mxu0 %vm1160_vm1, %v1159_v5 }
 0x115   : > { %v489_v23 = vpop.permute.xlu1 %488 }
 0x119   : > { %v485_v26 = vpop.permute.xlu1 %484 }
 0x174   : > { %v420_v21 = vpop.f32.mrf.mxu0 }
 0x175   : > { %v1281_v22 = vadd.f32 %v1019_v20, %v420_v21 }
 0x176   : > { %v1057_v24 = vpop.f32.mrf.mxu0 }
 0x177   : > { %v491_v25 = vmul.f32 %v489_v23, %v1281_v22  ;;  %v487_v27 = vmul.f32 %v485_v26, %v1281_v22  ;;  %v499_v23 = vld [vmem:[%s1379_s6] sm:$0xf] }
 0x178   : > { %1073 = vmatpush3.msk.msra.mxu0 %vm728_vm6, %v499_v23 }
 0x179   : > { %493 = vrot.lane.b32.xlu1 %v491_v25, %s1164_s9 }
 0x17d   : > { %475 = vrot.lane.b32.xlu1 %v444_v14, %s1163_s23 }
 0x181   : > { %429 = vrot.lane.b32.xlu1 %v424_v0, %s1164_s9 }
 0x185   : > { %432 = vrot.lane.b32.xlu1 %v424_v0, %s1165_s10  ;;  %s1016_s10 = sshll.u32 %s1148_s24, 2 }
 0x186   : > { %p313_p5 = scmp.lt.s32.totalorder %s1016_s10, 7 }
 0x188   : > { %s1386_s10 = smov (!%p313_p5, %s1016_s10), 7 }
 0x1eb   : > { %v494_v28 = vpop.permute.xlu1 %493 }
 0x1ec   : > { %v496_v29 = vadd.f32 %v494_v28, %v487_v27 }
 0x1ee   : > { %520 = vrot.lane.b32.xlu1 %v496_v29, %s1166_s11  ;;  %517 = vrot.lane.b32.xlu0 %v496_v29, %s1167_s12 }
 0x1ef   : > { %v476_v30 = vpop.permute.xlu1 %475 }
 0x1f0   : > { %v478_v33 = vmul.f32 %v476_v30, %v1281_v22 }
 0x1f2   : > { %526 = vrot.lane.b32.xlu1 %v496_v29, %s1168_s13  ;;  %523 = vrot.lane.b32.xlu0 %v496_v29, %s1169_s14 }
 0x1f3   : > { %v430_v31 = vpop.permute.xlu1 %429 }
 0x1f4   : > { %v446_v34 = vsel %vm439_vm4, %v445_v32, %v430_v31  ;;  %v438_v36 = vsel %vm437_vm3, %v436_v15, %v430_v31 }
 0x1f5   : > { %v463_v37 = vmul.f32 %v446_v34, %v1281_v22 }
 0x1f6   : > { %470 = vrot.lane.b32.xlu1 %v436_v15, %s1162_s22  ;;  %624 = vrot.lane.b32.xlu0 %v496_v29, %s1170_s15  ;;  %s1175_s22 = smov 108  }
 0x1f7   : > { %v433_v35 = vpop.permute.xlu1 %432 }
 0x1f8   : > { %v440_v38 = vsel %vm439_vm4, %v438_v36, %v433_v35 }
 0x1f9   : > { %v447_v10 = vmul.f32 %v440_v38, %v1281_v22 }
 0x1fa   : > { %480 = vrot.lane.b32.xlu0 %v478_v33, %s1171_s16  ;;  %449 = vrot.lane.b32.xlu1 %v446_v34, %s1172_s17 }
 0x1fe   : > { %459 = vrot.lane.b32.xlu0 %v440_v38, %s1172_s17  ;;  %465 = vrot.lane.b32.xlu1 %v463_v37, %s1172_s17 }
 0x260   : > { %v518_v39 = vpop.permute.xlu0 %517  ;;  %v521_v40 = vpop.permute.xlu1 %520 }
 0x261   : > { %v529_v41 = vsel %vm435_vm2, %v518_v39, %v521_v40 }
 0x264   : > { %v524_v42 = vpop.permute.xlu0 %523  ;;  %v527_v43 = vpop.permute.xlu1 %526 }
 0x265   : > { %v530_v44 = vsel %vm437_vm3, %v529_v41, %v524_v42 }
 0x266   : > { %v531_v45 = vsel %vm439_vm4, %v530_v44, %v527_v43 }
 0x267   : > { %534 = vrot.lane.b32.xlu0 %v531_v45, %s1172_s17 }
 0x268   : > { %v625_v46 = vpop.permute.xlu0 %624  ;;  %v471_v47 = vpop.permute.xlu1 %470 }
 0x269   : > { %v627_v48 = vsel %vm435_vm2, %v625_v46, %v518_v39  ;;  %v473_v50 = vmul.f32 %v471_v47, %v1281_v22 }
 0x26a   : > { %v628_v49 = vsel %vm437_vm3, %v627_v48, %v521_v40 }
 0x26b   : > { %v629_v51 = vsel %vm439_vm4, %v628_v49, %v524_v42 }
 0x26c   : > { %v481_v52 = vpop.permute.xlu0 %480  ;;  %632 = vrot.lane.b32.xlu1 %v629_v51, %s1172_s17  ;;  %v450_v55 = vpop.permute.xlu1 %449 }
 0x26d   : > { %v483_v54 = vsub.f32 %v473_v50, %v481_v52  ;;  %v452_v56 = vmul.f32 %v450_v55, %v1281_v22 }
 0x26f   : > { %501 = vrot.lane.b32.xlu0 %v483_v54, %s1169_s14 }
 0x270   : > { %504 = vrot.lane.b32.xlu1 %v483_v54, %s1168_s13  ;;  %v460_v58 = vpop.permute.xlu0 %459  ;;  %v466_v60 = vpop.permute.xlu1 %465 }
 0x271   : > { %v462_v59 = vmul.f32 %v460_v58, %v1281_v22 }
 0x273   : > { %454 = vrot.lane.b32.xlu0 %v452_v56, %s1173_s20  ;;  %v468_v61 = vadd.f32 %v466_v60, %v462_v59 }
 0x274   : > { %507 = vrot.lane.b32.xlu1 %v483_v54, %s1174_s21 }
 0x277   : > { %510 = vrot.lane.b32.xlu0 %v483_v54, %s1175_s22 }
 0x278   : > { %618 = vrot.lane.b32.xlu1 %v483_v54, %s1166_s11  ;;  %s1017_s11 = sshll.u32 %s1386_s10, 3 }
 0x279   : > { %s319_s13 = scalar_lea.vmem %s1380_s7, %s1017_s11 }
 0x2d9   : > { %v535_v62 = vpop.permute.xlu0 %534 }
 0x2da   : > { %v537_v63 = vmul.f32 %v535_v62, %v468_v61 }
 0x2dc   : > { %539 = vrot.lane.b32.xlu0 %v537_v63, %s1173_s20 }
 0x2de   : > { %v633_v0 = vpop.permute.xlu1 %632 }
 0x2df   : > { %v635_v1 = vmul.f32 %v633_v0, %v468_v61 }
 0x2e0   : > { %803 = vrot.lane.b32.xlu0 %v1281_v22, %s1176_s29 }
 0x2e1   : > { %637 = vrot.lane.b32.xlu1 %v635_v1, %s1173_s20  ;;  %v502_v3 = vpop.permute.xlu0 %501 }
 0x2e2   : > { %v505_v2 = vpop.permute.xlu1 %504 }
 0x2e3   : > { %v513_v9 = vsel %vm435_vm2, %v502_v3, %v505_v2 }
 0x2e4   : > { %894 = vrot.lane.b32.xlu0 %v1281_v22, %s1177_s30 }
 0x2e5   : > { %806 = vrot.lane.b32.xlu1 %v1281_v22, %s1167_s12  ;;  %v455_v6 = vpop.permute.xlu0 %454 }
 0x2e6   : > { %v508_v4 = vpop.permute.xlu1 %507  ;;  %v457_v14 = vsub.f32 %v447_v10, %v455_v6 }
 0x2e7   : > { %v514_v11 = vsel %vm437_vm3, %v513_v9, %v508_v4 }
 0x2e8   : > { %812 = vrot.lane.b32.xlu0 %v1281_v22, %s1174_s21 }
 0x2e9   : > { %809 = vrot.lane.b32.xlu1 %v1281_v22, %s1169_s14  ;;  %v511_v8 = vpop.permute.xlu0 %510 }
 0x2ea   : > { %v619_v7 = vpop.permute.xlu1 %618  ;;  %v515_v13 = vsel %vm439_vm4, %v514_v11, %v511_v8 }
 0x2eb   : > { %v621_v12 = vsel %vm435_vm2, %v619_v7, %v502_v3  ;;  %v532_v16 = vmul.f32 %v515_v13, %v457_v14 }
 0x2ec   : > { %v622_v15 = vsel %vm437_vm3, %v621_v12, %v505_v2 }
 0x2ed   : > { %v623_v19 = vsel %vm439_vm4, %v622_v15, %v508_v4 }
 0x2ee   : > { %v630_v20 = vmul.f32 %v623_v19, %v457_v14 }
 0x34e   : > { %v540_v17 = vpop.permute.xlu0 %539 }
 0x34f   : > { %v542_v18 = vadd.f32 %v540_v17, %v532_v16 }
 0x351   : > { %1063 = vmatmul.mubr.msk.f32.vlgmr.msra.gmra.mxu1 %vm543_vm5, %v542_v18 }
 0x352   : > { %1066 = vmatpush3.msra.mxu1 %v498_v53  ;;  %1069 = vmatprep.mubr.msk.f32.mxu1 %vm1160_vm1, %v1159_v5  ;;  %v804_v40 = vpop.permute.xlu0 %803 }
 0x353   : > { %1067 = vmatprep.subr.mxu1 %v1159_v5  ;;  %v638_v21 = vpop.permute.xlu1 %637 }
 0x354   : > { %v640_v22 = vadd.f32 %v638_v21, %v630_v20  ;;  %1068 = vmatpush3.msra.mxu1 %v497_v57 }
 0x355   : > { %1077 = vmatprep.subr.mxu1 %v1159_v5 }
 0x356   : > { %1070 = vmatmul.mubr.msk.f32.vlgmr.msra.gmra.mxu1 %vm543_vm5, %v640_v22  ;;  %v895_v42 = vpop.permute.xlu0 %894 }
 0x357   : > { %1079 = vmatprep.mubr.msk.f32.mxu1 %vm1160_vm1, %v1159_v5  ;;  %1078 = vmatpush3.msk.msra.mxu1 %vm728_vm6, %v499_v23  ;;  %v807_v41 = vpop.permute.xlu1 %806  ;;  %v897_v44 = vsel %vm437_vm3, %v895_v42, %v804_v40 }
 0x358   : > { %v815_v45 = vsel %vm437_vm3, %v804_v40, %v807_v41  ;;  %v898_v47 = vsel %vm543_vm5, %v897_v44, %v807_v41 }
 0x35a   : > { %v813_v48 = vpop.permute.xlu0 %812 }
 0x35b   : > { %v810_v43 = vpop.permute.xlu1 %809 }
 0x35c   : > { %v816_v46 = vsel %vm543_vm5, %v815_v45, %v810_v43  ;;  %v899_v52 = vsel %vm817_vm7, %v898_v47, %v810_v43 }
 0x35d   : > { %v818_v50 = vsel %vm817_vm7, %v816_v46, %v813_v48 }
 0x411   : > { %v613_v24 = vpop.f32.mrf.mxu1 }
 0x412   : > { %v617_v27 = vmul.f32 0.35355338, %v613_v24 }
 0x413   : > { %v1064_v25 = vpop.f32.mrf.mxu1 }
 0x416   : > { %v710_v26 = vpop.f32.mrf.mxu1 }
 0x417   : > { %v714_v28 = vmul.f32 0.35355338, %v710_v26 }
 0x418   : > { %v1071_v29 = vpop.f32.mrf.mxu1 }
 0x419   : > { %v715_v30 = vmax.f32 %v617_v27, %v714_v28 }
 0x41b   : > { %v716_v31 = vsub.f32 %v617_v27, %v715_v30  ;;  %v719_v32 = vsub.f32 %v714_v28, %v715_v30 }
 0x41d   : > { %v717_v33 = vmul.f32 1.442695, %v716_v31  ;;  %v720_v34 = vmul.f32 1.442695, %v719_v32 }
 0x41f   : > { %1128 = vpow2.f32 %v717_v33 }
 0x420   : > { %1130 = vpow2.f32 %v720_v34 }
 0x42c   : > { %v1129_v5 = vpop.eup %1128 }
 0x42d   : > { %v1131_v35 = vpop.eup %1130 }
 0x42e   : > { %v722_v36 = vadd.f32 %v1131_v35, %v1129_v5 }
 0x430   : > { %1132 = vrcp.f32 %v722_v36 }
 0x43d   : > { %v1133_v37 = vpop.eup %1132 }
 0x43e   : > { %v724_v38 = vmul.f32 %v1133_v37, %v1129_v5  ;;  %v820_v39 = vmul.f32 %v1133_v37, %v1131_v35 }
 0x440   : > { %1075 = vmatmul.mubr.msk.f32.vlgmr.msra.gmra.mxu0 %vm435_vm2, %v724_v38  ;;  %1080 = vmatmul.mubr.msk.f32.vlgmr.msra.gmra.mxu1 %vm435_vm2, %v820_v39 }
 0x500   : > { %v798_v49 = vpop.f32.mrf.mxu0  ;;  %v890_v51 = vpop.f32.mrf.mxu1 }
 0x501   : > { %v819_v53 = vmul.f32 %v818_v50, %v798_v49  ;;  %v900_v54 = vmul.f32 %v899_v52, %v890_v51 }
 0x502   : > { %v1076_v55 = vpop.f32.mrf.mxu0  ;;  %v1081_v56 = vpop.f32.mrf.mxu1 }
 0x503   : > { %v901_v57 = vadd.f32 %v900_v54, %v819_v53 }
 0x505   : > { %909 = vrot.lane.b32.xlu0 %v901_v57, %s1173_s20  ;;  %904 = vrot.lane.b32.xlu1 %v901_v57, %s1171_s16  ;;  %902 = vst.msk [vmem:[%s319_s13] sm:$0xff] %vm437_vm3, %v901_v57 }
 0x509   : > { %914 = vrot.lane.b32.xlu1 %v901_v57, %s1174_s21 }
 0x577   : > { %v910_v58 = vpop.permute.xlu0 %909  ;;  %v905_v59 = vpop.permute.xlu1 %904 }
 0x578   : > { %1027 = vst.msk [vmem:[%s319_s13 + $0x8] sm:$0xff] %vm437_vm3, %v905_v59  ;;  %1028 = vst.msk [vmem:[%s319_s13 + $0x10] sm:$0xff] %vm437_vm3, %v910_v58 }
 0x57b   : > { %v915_v60 = vpop.permute.xlu1 %914 }
 0x57c   : > { %1029 = vst.msk [vmem:[%s319_s13 + $0x18] sm:$0xff] %vm437_vm3, %v915_v60 }
 0x57d PF: > { %s17_s26 = sadd.s32 1, %s1156_s26   ;;  %s1381_s24 = smov %s1152_s25 }
 0x57e   : > { %p14_p6 = scmp.ge.s32.totalorder %s17_s26, 4   ;;  %s1382_s25 = smov %s1384_s27 }
 0x580   :  { %16 = sbr.rel (!%p14_p6) target bundleno = 2 (0x2), region = 84 }

</bundles_post_ra>
